<compile_context>
chip_gen: v7x
topology: tpu7x:2x2x1
jax: 0.10.0
libtpu: 0.0.40
codegen_flags: <defaults>
</compile_context>

<pallas_src>
import math
import jax
import jax.numpy as jnp
from jax.experimental import pallas as pl
from jax.experimental.pallas import tpu as pltpu


def _round_up(a, m):
    return -(-a // m) * m


def _decoder_kernel(x_ref, w_ref, b_ref, o_ref):
    # x_ref: (sb_tile, N*L)  bf16 VMEM      w_ref: (N*L, col_tile) bf16 VMEM
    # b_ref: (1, 1)          f32  SMEM      o_ref: (sb_tile, col_tile) f32 VMEM
    o_ref[...] = (
        jnp.dot(x_ref[...], w_ref[...], preferred_element_type=jnp.float32)
        + b_ref[0, 0]
    )


def _build_banded_weight(weight, N, L, K, hop, L_out_pad):
    """(N*L, L_out_pad): row n*L + l carries w[n, 0, :] at cols [l*hop, l*hop+K)."""
    w2d = weight.reshape(N, K).astype(jnp.float32)
    c = jnp.arange(L_out_pad)[None, :]              # (1, C)
    l = jnp.arange(L)[:, None]                      # (L, 1)
    k = c - l * hop                                 # (L, C): tap index per (frame, col)
    valid = (k >= 0) & (k < K)
    idx = jnp.clip(k, 0, K - 1)
    w_band = jnp.where(valid[None, :, :], w2d[:, idx], 0.0)   # (N, L, C)
    return w_band.reshape(N * L, L_out_pad)


def decoder_forward(x, weight, bias, kernel_size):
    """ConvTranspose1d(N, 1, K, stride=K//2, padding=0) over x: [spk, B, N, L]."""
    spk, B, N, L = x.shape
    K = int(kernel_size)
    assert K >= 2, "stride = K // 2 must be >= 1"
    hop = K // 2
    L_out = (L - 1) * hop + K
    SB = spk * B
    NL = N * L
    L_out_pad = _round_up(L_out, 128)               # lane-dense output store

    # ---- VMEM budget (generation aware) -------------------------------------
    try:
        vmem_cap = int(pltpu.get_tpu_info().vmem_capacity_bytes)
    except Exception:
        vmem_cap = 64 * 1024 * 1024                 # conservative (v7x) fallback
    vmem_budget = int(vmem_cap * 3 // 4)

    # ---- tile selection ------------------------------------------------------
    sb_all = _round_up(SB, 8)
    # Target ~4 MiB of bf16 input rows per block (double-buffered by Pallas).
    sb_tile = min(sb_all, max(8, _round_up((4 << 20) // max(2 * NL, 1), 8)))
    if sb_all // sb_tile < 2 and sb_all >= 16:
        sb_tile = _round_up(sb_all // 2, 8)         # >= 2 grid steps for megacore
    SB_pad = _round_up(SB, sb_tile)
    n_batch_tiles = SB_pad // sb_tile

    if n_batch_tiles == 1 and L_out_pad >= 256:
        # Single batch tile: split output columns so both v7x TensorCores get work.
        L_out_pad = _round_up(L_out, 256)
        col_tile = L_out_pad // 2
        n_col_tiles = 2
    else:
        col_tile = L_out_pad
        n_col_tiles = 1

    def _block_bytes(sbt):
        return (2 * sbt * NL * 2                    # x block     (bf16, 2 buffers)
                + 2 * NL * col_tile * 2             # band block  (bf16, 2 buffers)
                + 2 * sbt * col_tile * 4)           # out block   (f32,  2 buffers)

    while sb_tile > 8 and _block_bytes(sb_tile) > vmem_budget:
        sb_tile = max(8, _round_up(sb_tile // 2, 8))
        SB_pad = _round_up(SB, sb_tile)
    assert _block_bytes(sb_tile) <= vmem_budget, (
        "banded decoder blocks do not fit VMEM; very large L needs the L-tiled "
        "variant (see TODO at top of file)")
    n_batch_tiles = SB_pad // sb_tile

    vmem_limit = int(min(vmem_budget,
                         max(32 * 1024 * 1024, _block_bytes(sb_tile) + (4 << 20))))

    # ---- host-side prep (no transpose: native channel-major flatten) ---------
    # NOTE: in a full model the bf16 cast fuses with the producer of x.
    x_rows = x.reshape(SB, NL).astype(jnp.bfloat16)
    if SB_pad != SB:
        x_rows = jnp.pad(x_rows, ((0, SB_pad - SB), (0, 0)))

    w_band = _build_banded_weight(weight, N, L, K, hop, L_out_pad).astype(jnp.bfloat16)
    b2d = bias.reshape(1, 1).astype(jnp.float32)

    grid = (n_batch_tiles, n_col_tiles)
    cost = pl.CostEstimate(
        flops=2 * SB_pad * NL * L_out_pad,
        transcendentals=0,
        bytes_accessed=(SB_pad * NL * 2 * n_col_tiles
                        + NL * L_out_pad * 2 * n_batch_tiles
                        + SB_pad * L_out_pad * 4),
    )

    out_pad = pl.pallas_call(
        _decoder_kernel,
        out_shape=jax.ShapeDtypeStruct((SB_pad, L_out_pad), jnp.float32),
        grid_spec=pltpu.PrefetchScalarGridSpec(
            num_scalar_prefetch=0,
            grid=grid,
            in_specs=[
                pl.BlockSpec((sb_tile, NL), lambda i, c: (i, 0)),
                pl.BlockSpec((NL, col_tile), lambda i, c: (0, c)),
                pl.BlockSpec(memory_space=pltpu.MemorySpace.SMEM),   # bias scalar
            ],
            out_specs=pl.BlockSpec((sb_tile, col_tile), lambda i, c: (i, c)),
        ),
        compiler_params=pltpu.CompilerParams(
            dimension_semantics=("parallel", "parallel"),
            vmem_limit_bytes=vmem_limit),
        cost_estimate=cost,
    )(x_rows, w_band, b2d)

    out = out_pad[:SB, :L_out]
    return out.reshape(spk, B, 1, L_out)


def decoder_reference(x, weight, bias, kernel_size):
    """Pure-JAX reference for ConvTranspose1d(N, 1, K, stride=K//2, padding=0)."""
    spk, B, N, L = x.shape
    K = kernel_size
    hop = K // 2
    L_out = (L - 1) * hop + K
    w2d = weight.reshape(N, K)
    frames = jnp.einsum('sbnl,nk->sblk', x, w2d,
                        precision=jax.lax.Precision.HIGHEST)   # (spk, B, L, K)
    out = jnp.full((spk, B, 1, L_out), bias[0], dtype=jnp.float32)
    for l in range(L):
        out = out.at[:, :, 0, l * hop:l * hop + K].add(frames[:, :, l, :])
    return out


if __name__ == "__main__":
    # Small shapes consistent with the module's forward.
    spk, B = 2, 2
    in_channels = 32          # N
    kernel_size = 16          # K  (stride = 8)
    L = 8

    key = jax.random.PRNGKey(0)
    kx, kw, kb = jax.random.split(key, 3)

    x = jax.random.normal(kx, (spk, B, in_channels, L), dtype=jnp.float32)

    # Deterministic param init (PyTorch-style uniform bound).
    bound = 1.0 / math.sqrt(in_channels * kernel_size)
    weight = jax.random.uniform(kw, (in_channels, 1, kernel_size),
                                minval=-bound, maxval=bound, dtype=jnp.float32)
    bias = jax.random.uniform(kb, (1,), minval=-bound, maxval=bound,
                              dtype=jnp.float32)

    out = decoder_forward(x, weight, bias, kernel_size)
    out = jax.block_until_ready(out)

    L_out = (L - 1) * (kernel_size // 2) + kernel_size
    assert out.shape == (spk, B, 1, L_out)

    # Tight check vs an f32 reference evaluated on bf16-rounded operands (the
    # kernel feeds the MXU bf16 operands with f32 accumulation), plus a loose
    # check vs the full-f32 reference documenting the precision tradeoff.
    ref_bf = decoder_reference(x.astype(jnp.bfloat16).astype(jnp.float32),
                               weight.astype(jnp.bfloat16).astype(jnp.float32),
                               bias, kernel_size)
    ref_f32 = decoder_reference(x, weight, bias, kernel_size)
    assert jnp.allclose(out, ref_bf, atol=1e-4, rtol=1e-4)
    assert jnp.allclose(out, ref_f32, atol=5e-2, rtol=5e-2)

    print("KERNEL_OK")
</pallas_src>

<mosaic_0001>
module attributes {stable_mosaic.version = 11 : i64} {
  func.func @_decoder_kernel(%arg0: i32, %arg1: i32, %arg2: memref<8x256xbf16, #tpu.memory_space<vmem>>, %arg3: memref<256x128xbf16, #tpu.memory_space<vmem>>, %arg4: memref<1x1xf32, #tpu.memory_space<smem>>, %arg5: memref<8x128xf32, #tpu.memory_space<vmem>>) attributes {dimension_semantics = [#tpu.dimension_semantics<parallel>, #tpu.dimension_semantics<parallel>], iteration_bounds = array<i64: 1, 1>, scalar_prefetch = 0 : i64, scratch_operands = 0 : i64, tpu.core_type = #tpu.core_type<tc>, window_params = [{transform_indices = @transform_0, window_bounds = array<i64: 8, 256>}, {transform_indices = @transform_1, window_bounds = array<i64: 256, 128>}, {transform_indices = @transform_2, window_bounds = array<i64: 1, 1>}, {transform_indices = @transform_3, window_bounds = array<i64: 8, 128>}]} {
    %c0 = arith.constant 0 : index
    %c0_0 = arith.constant 0 : index
    %0 = vector.load %arg2[%c0, %c0_0] : memref<8x256xbf16, #tpu.memory_space<vmem>>, vector<8x256xbf16>
    %c0_1 = arith.constant 0 : index
    %c0_2 = arith.constant 0 : index
    %1 = vector.load %arg3[%c0_1, %c0_2] : memref<256x128xbf16, #tpu.memory_space<vmem>>, vector<256x128xbf16>
    %cst = arith.constant dense<0.000000e+00> : vector<8x128xf32>
    %2 = tpu.matmul %0, %1, %cst {dimension_numbers = #tpu.dot_dimension_numbers<[1], [0], [0], [1], [0, 0, 1, 1], [], []>} : vector<8x256xbf16>, vector<256x128xbf16>, vector<8x128xf32> -> vector<8x128xf32>
    %c0_3 = arith.constant 0 : index
    %c0_4 = arith.constant 0 : index
    %3 = memref.load %arg4[%c0_3, %c0_4] : memref<1x1xf32, #tpu.memory_space<smem>>
    %4 = vector.broadcast %3 : f32 to vector<8x128xf32>
    %5 = arith.addf %2, %4 : vector<8x128xf32>
    %c0_5 = arith.constant 0 : index
    %c0_6 = arith.constant 0 : index
    %6 = vector.load %arg5[%c0_5, %c0_6] : memref<8x128xf32, #tpu.memory_space<vmem>>, vector<8x128xf32>
    tpu.vector_store %arg5[%c0_5, %c0_6], %5 {strides = array<i32>} : memref<8x128xf32, #tpu.memory_space<vmem>>, vector<8x128xf32>,
    return
  }
  func.func @transform_0(%arg0: i32, %arg1: i32) -> (i32, i32) {
    %c0_i32 = arith.constant 0 : i32
    %c0_i32_0 = arith.constant 0 : i32
    return %arg0, %c0_i32 : i32, i32
  }
  func.func @transform_1(%arg0: i32, %arg1: i32) -> (i32, i32) {
    %c0_i32 = arith.constant 0 : i32
    %c0_i32_0 = arith.constant 0 : i32
    return %c0_i32, %arg1 : i32, i32
  }
  func.func @transform_2(%arg0: i32, %arg1: i32) -> (i32, i32) {
    %c0_i32 = arith.constant 0 : i32
    %c0_i32_0 = arith.constant 0 : i32
    %c0_i32_1 = arith.constant 0 : i32
    return %c0_i32, %c0_i32_0 : i32, i32
  }
  func.func @transform_3(%arg0: i32, %arg1: i32) -> (i32, i32) {
    %c0_i32 = arith.constant 0 : i32
    return %arg0, %arg1 : i32, i32
  }
}

</mosaic_0001>

<bundles_post_ra>
// kernel: tpu_custom_call.1
= control target key start
LH: loop header
LB: loop body
LE: loop exit
PB: predicated region body
PF: predicated region fallthrough
CT: control target
= control target key end

     0   :  { %9 = vsyncpa [#allocation4], 0  ;;  %s444_s0 = inlined_call_operand.hbm [shape: bf16[8,256], index: 0, kind: input, shape index: {}]   ;;  %s445_s1 = inlined_call_operand.hbm [shape: bf16[256,128], index: 1, kind: input, shape index: {}]   ;;  %s446_s2 = inlined_call_operand.<no memory space> [shape: f32[1,1], index: 2, kind: input, shape index: {}]   ;;  %s447_s3 = inlined_call_operand.hbm [shape: f32[8,128], index: 3, kind: output, shape index: {}]  }
   0x1   :  { %10 = vsyncpa [#allocation7], 0 }
   0x2   :  { %11 = vsyncpa [#allocation5], 0  ;;  %s373_s12 = smov [#allocation3]   ;;  %s374_s14 = smov [#allocation6]  }
   0x3   :  { %s18_s13 = sshll.u32 %s373_s12, 4  ;;  %s27_s15 = sshll.u32 %s374_s14, 4  ;;  %s19_s13 = int_to_ptr.vmem [resolvable:$true] %s18_s13  ;;  %s398_s15 = int_to_ptr.vmem [resolvable:$true] %s27_s15 }
   0x4   :  { %s301_s18 = scalar_lea.hbm %s444_s0, 128 }
   0x5   :  { %p302_p0 = scmp.ne.s32.totalorder %s444_s0, %s301_s18  ;;  %p305_p1 = scmp.lt.u32.totalorder %s301_s18, %s444_s0 }
   0x7   :  { %p307_p2 = pnand %p305_p1, %p302_p0 }
   0x9   :  { %310 = shalt.err (!%p307_p2)
}
   0xa   :  { %s311_s23 = scalar_lea.vmem %s19_s13, 128  ;;  %p316_p4 = scmp.lt.s32.totalorder %s19_s13, %s19_s13 }
   0xb   :  { %p312_p3 = scmp.ne.s32.totalorder %s19_s13, %s311_s23  ;;  %p317_p5 = scmp.lt.s32.totalorder %s311_s23, %s311_s23 }
   0xd   :  { %p318_p6 = por %p317_p5, %p316_p4 }
   0xf   :  { %p319_p7 = pnand %p318_p6, %p312_p3 }
  0x11   :  { %322 = shalt.err (!%p319_p7)
}
  0x12   :  { %21 = dma.hbm_to_vmem [thread:$0]  %s444_s0, 128, %s19_s13, [#allocation4]  }
  0x13   :  { %s323_s28 = scalar_lea.hbm %s445_s1, 2048 }
  0x14   :  { %p324_p8 = scmp.ne.s32.totalorder %s445_s1, %s323_s28  ;;  %p327_p9 = scmp.lt.u32.totalorder %s323_s28, %s445_s1 }
  0x16   :  { %p329_p10 = pnand %p327_p9, %p324_p8 }
  0x18   :  { %332 = shalt.err (!%p329_p10)
}
  0x19   :  { %s333_s6 = scalar_lea.vmem %s398_s15, 2048  ;;  %p338_p12 = scmp.lt.s32.totalorder %s398_s15, %s398_s15 }
  0x1a   :  { %p334_p11 = scmp.ne.s32.totalorder %s398_s15, %s333_s6  ;;  %p339_p13 = scmp.lt.s32.totalorder %s333_s6, %s333_s6 }
  0x1c   :  { %p340_p0 = por %p339_p13, %p338_p12 }
  0x1e   :  { %p341_p1 = pnand %p340_p0, %p334_p11 }
  0x20   :  { %344 = shalt.err (!%p341_p1)
}
  0x21   :  { %s375_s0 = smov 64   ;;  %s376_s7 = smov 4  }
  0x22   :  { %33 = dma.hbm_to_vmem [thread:$0]  %s445_s1, 2048, %s398_s15, [#allocation7], %s375_s0, %s375_s0, %s376_s7  }
  0x23   :  { %367 = dma.done.wait [#allocation4], 128  }
  0x24   :  { %368 = vsyncadd [#allocation4], 4294967168 }
  0x25   :  { %369 = dma.done.wait [#allocation7], 2048  }
  0x26   :  { %370 = vsyncadd [#allocation7], 4294965248  ;;  %v283_v0 = vld [vmem:[#allocation6 + $0x40] sm:$0xff]   ;;  %v285_v2 = vld [vmem:[#allocation6 + $0x48] sm:$0xff]   ;;  %v77_v20 = vstv %s446_s2  ;;  %s377_s11 = smov [#allocation8]  }
  0x27   :  { %v284_v1 = vld [vmem:[#allocation6] sm:$0xff]   ;;  %256 = vmatprep.subr.bf16.mxu0 %v283_v0  ;;  %v286_v3 = vld [vmem:[#allocation6 + $0x8] sm:$0xff]   ;;  %v287_v4 = vld [vmem:[#allocation6 + $0x50] sm:$0xff]   ;;  %s228_s12 = sshll.u32 %s377_s11, 4  ;;  %s229_s12 = int_to_ptr.vmem [resolvable:$true] %s228_s12 }
  0x28   :  { %257 = vmatpush3.bf16.msra.mxu0 %v284_v1  ;;  %v288_v5 = vld [vmem:[#allocation6 + $0x10] sm:$0xff]   ;;  %v289_v6 = vld [vmem:[#allocation6 + $0x58] sm:$0xff]   ;;  %v291_v8 = vld [vmem:[#allocation6 + $0x60] sm:$0xff]   ;;  %s345_s13 = scalar_lea.vmem %s229_s12, 128  ;;  %p350_p3 = scmp.lt.s32.totalorder %s229_s12, %s229_s12 }
  0x29   :  { %258 = vmatprep.subr.bf16.mxu0 %v285_v2  ;;  %v290_v7 = vld [vmem:[#allocation6 + $0x18] sm:$0xff]   ;;  %v292_v9 = vld [vmem:[#allocation6 + $0x20] sm:$0xff]   ;;  %v293_v10 = vld [vmem:[#allocation6 + $0x68] sm:$0xff]   ;;  %p346_p2 = scmp.ne.s32.totalorder %s229_s12, %s345_s13  ;;  %p351_p4 = scmp.lt.s32.totalorder %s345_s13, %s345_s13 }
  0x2a   :  { %v43_v11 = vld [vmem:[#allocation3] sm:$0xff]  ;;  %v294_v13 = vld [vmem:[#allocation6 + $0x28] sm:$0xff]   ;;  %v295_v14 = vld [vmem:[#allocation6 + $0x70] sm:$0xff]  }
  0x2b   :  { %v239_v12 = vcombine.high %v43_v11, %v43_v11  ;;  %v296_v15 = vld [vmem:[#allocation6 + $0x30] sm:$0xff]   ;;  %v297_v16 = vld [vmem:[#allocation6 + $0x78] sm:$0xff]   ;;  %v238_v18 = vcombine.low %v43_v11, %v43_v11  ;;  %p352_p5 = por %p351_p4, %p350_p3 }
  0x2c   :  { %259 = vmatpush3.bf16.msra.mxu0 %v286_v3  ;;  %v298_v17 = vld [vmem:[#allocation6 + $0x38] sm:$0xff]  }
  0x2d   :  { %260 = vmatprep.subr.bf16.mxu0 %v287_v4  ;;  %213 = vmatprep.mubr.bf16.mxu0 %v239_v12  ;;  %p353_p6 = pnand %p352_p5, %p346_p2 }
  0x30   :  { %261 = vmatpush3.bf16.msra.mxu0 %v288_v5 }
  0x31   :  { %262 = vmatprep.subr.bf16.mxu0 %v289_v6 }
  0x34   :  { %263 = vmatpush3.bf16.msra.mxu0 %v290_v7 }
  0x35   :  { %264 = vmatprep.subr.bf16.mxu0 %v291_v8 }
  0x38   :  { %265 = vmatpush3.bf16.msra.mxu0 %v292_v9 }
  0x39   :  { %266 = vmatprep.subr.bf16.mxu0 %v293_v10 }
  0x3c   :  { %267 = vmatpush3.bf16.msra.mxu0 %v294_v13 }
  0x3d   :  { %268 = vmatprep.subr.bf16.mxu0 %v295_v14 }
  0x40   :  { %269 = vmatpush3.bf16.msra.mxu0 %v296_v15 }
  0x41   :  { %270 = vmatprep.subr.bf16.mxu0 %v297_v16 }
  0x44   :  { %271 = vmatpush3.bf16.msra.mxu0 %v298_v17 }
  0x47   :  { %214 = vmatmul.mubr.bf16.vlgmr.msra.gmra.mrb[0].mxu0 %v238_v18 }
 0x11a   :  { %v272_v19 = vpop.f32.mrb[0].mxu0 }
 0x11b   :  { %v273_v21 = vpop.f32.mrb[1].mxu0 }
 0x11c   :  { %v274_v22 = vadd.f32 %v273_v21, %v272_v19  ;;  %v275_v23 = vpop.f32.mrb[2].mxu0 }
 0x11d   :  { %v276_v24 = vpop.f32.mrb[3].mxu0 }
 0x11e   :  { %v216_v25 = vadd.f32 %v274_v22, %v77_v20 }
 0x120   :  { %221 = vst [vmem:[#allocation8] sm:$0xff] %v216_v25 }
 0x121   :  { %356 = shalt.err (!%p353_p6)
}
 0x122   :  { %s357_s2 = scalar_lea.hbm %s447_s3, 128 }
 0x123   :  { %p358_p7 = scmp.ne.s32.totalorder %s447_s3, %s357_s2  ;;  %p361_p8 = scmp.lt.u32.totalorder %s357_s2, %s447_s3 }
 0x125   :  { %p363_p9 = pnand %p361_p8, %p358_p7 }
 0x127   :  { %366 = shalt.err (!%p363_p9)
}
 0x128   :  { %231 = dma.vmem_to_hbm [thread:$0]  %s229_s12, 128, %s447_s3, [#allocation5]  }
 0x129   :  { %371 = dma.done.wait [#allocation5], 128  }
 0x12a   :  { %372 = vsyncadd [#allocation5], 4294967168 }
 0x12b   :  { %235 = vsyncpa [#allocation4], 1 }
 0x12c   :  { %236 = vsyncpa [#allocation7], 1 }
 0x12d   :  { %237 = vsyncpa [#allocation5], 1 }

</bundles_post_ra>
